<compile_context>
chip_gen: v7x
topology: tpu7x:2x2x1
jax: 0.10.0
libtpu: 0.0.40
codegen_flags: <defaults>
</compile_context>

<pallas_src>
import functools

import jax
import jax.numpy as jnp
from jax.experimental import pallas as pl
from jax.experimental.pallas import tpu as pltpu

fmap_base = 8192
fmap_decay = 1.0
fmap_max = 512
nz = 100
nc = 3


def nf(stage):
    return min(int(fmap_base / 2.0 ** (stage * fmap_decay)), fmap_max)


# ---------------------------------------------------------------------------
# tiling helpers
# ---------------------------------------------------------------------------

def _row_tile(m, cap=512):
    """Largest row tile <= cap that evenly divides m."""
    if m <= cap:
        return m
    t = cap
    while m % t:
        t //= 2
    return max(t, 1)


def _cout_tile(c):
    """256-wide tiles feed the 256x256 MXU on v6e/v7x; otherwise 128 / full."""
    for t in (256, 128):
        if c % t == 0:
            return t
    return c


# ---------------------------------------------------------------------------
# Pallas kernels
# ---------------------------------------------------------------------------

def _dense_kernel(x_ref, w_ref, o_ref):
    o_ref[...] = jnp.dot(x_ref[...], w_ref[...],
                         preferred_element_type=jnp.float32)


def dense(x, w, nt=512):
    """(M, K) @ (K, N) -> (M, N) f32, tiled over output columns."""
    M, K = x.shape
    N = w.shape[1]
    nt = min(nt, N)
    assert N % nt == 0
    return pl.pallas_call(
        _dense_kernel,
        out_shape=jax.ShapeDtypeStruct((M, N), jnp.float32),
        grid=(N // nt,),
        in_specs=[pl.BlockSpec((M, K), lambda j: (0, 0)),
                  pl.BlockSpec((K, nt), lambda j: (0, j))],
        out_specs=pl.BlockSpec((M, nt), lambda j: (0, j)),
        compiler_params=pltpu.CompilerParams(
            dimension_semantics=("parallel",)),
    )(x, w)


def _conv3x3_kernel(P, Mo, x_ref, w_ref, o_ref):
    # x_ref: (1, (H+3)*P, Cin)  padded image rows (bf16)
    # w_ref: (9, Cin, ct)       taps (bf16)
    # o_ref: (1, H*P, ct)       padded-width output rows (f32)
    acc = jnp.zeros(o_ref.shape[1:], jnp.float32)
    for ky in range(3):
        for kx in range(3):
            off = ky * P + kx                    # constant row shift per tap
            acc = acc + jnp.dot(x_ref[0, pl.ds(off, Mo), :],
                                w_ref[ky * 3 + kx],
                                preferred_element_type=jnp.float32)
    o_ref[0, :, :] = acc


def conv3x3_t(x_nhwc, w):
    """ConvTranspose2d(Cin, Cout, 3, stride=1, padding=1), no bias, NHWC.

    Grid = (batch, Cout tiles), both parallel.  Each step holds one padded
    image block + one (9, Cin, ct) weight block in VMEM; no im2col in HBM.
    """
    # TODO(synk): at very high resolutions (>=128x128) the per-image block
    # should be further row-tiled with a manually DMA'd 2-row halo.
    N, H, W, Cin = x_nhwc.shape
    Cout = w.shape[-1]
    P = W + 2                       # padded width
    Mp = (H + 3) * P                # padded rows per image (+1 top, +2 bottom)
    Mo = H * P                      # output rows per image (cols >= W are junk)
    xp = jnp.pad(x_nhwc, ((0, 0), (1, 2), (1, 1), (0, 0))).reshape(N, Mp, Cin)
    wk = w.reshape(9, Cin, Cout)
    ct = _cout_tile(Cout)
    cost = pl.CostEstimate(
        flops=2 * 9 * N * Mo * Cin * Cout,
        transcendentals=0,
        bytes_accessed=int(N * (Cout // ct) * Mp * Cin * xp.dtype.itemsize
                           + N * 9 * Cin * Cout * wk.dtype.itemsize
                           + N * Mo * Cout * 4))
    out = pl.pallas_call(
        functools.partial(_conv3x3_kernel, P, Mo),
        out_shape=jax.ShapeDtypeStruct((N, Mo, Cout), jnp.float32),
        grid=(N, Cout // ct),
        in_specs=[pl.BlockSpec((1, Mp, Cin), lambda n, j: (n, 0, 0)),
                  pl.BlockSpec((9, Cin, ct), lambda n, j: (0, 0, j))],
        out_specs=pl.BlockSpec((1, Mo, ct), lambda n, j: (n, 0, j)),
        compiler_params=pltpu.CompilerParams(
            dimension_semantics=("parallel", "parallel")),
        cost_estimate=cost,
    )(xp, wk)
    # drop the 2 junk columns per row that the constant-shift trick produces
    return out.reshape(N, H, P, Cout)[:, :, :W, :]


def _bn_stats_kernel(x_ref, sum_ref, sq_ref):
    @pl.when(pl.program_id(0) == 0)
    def _():
        sum_ref[...] = jnp.zeros_like(sum_ref)
        sq_ref[...] = jnp.zeros_like(sq_ref)
    x = x_ref[...]
    sum_ref[...] += jnp.sum(x, axis=0, keepdims=True)
    sq_ref[...] += jnp.sum(x * x, axis=0, keepdims=True)


def _bn_apply_relu_kernel(x_ref, scale_ref, shift_ref, o_ref):
    y = x_ref[...] * scale_ref[...] + shift_ref[...]
    o_ref[...] = jnp.maximum(y, 0.0).astype(o_ref.dtype)


def batchnorm_relu(x_nhwc, gamma, beta, out_dtype=jnp.bfloat16):
    """Training-mode BatchNorm2d (batch stats, biased var, eps=1e-5) + ReLU.

    Two tiled passes: (1) per-channel sum / sum-of-squares accumulated across
    an 'arbitrary' M-tile axis (accumulator output resident in VMEM),
    (2) per-tile affine + ReLU ('parallel'), emitting bf16 for the downstream
    MXU matmuls.  The tiny (1, C) mean/var/scale/shift math stays in XLA.
    """
    N, H, W, C = x_nhwc.shape
    M = N * H * W
    x2 = x_nhwc.reshape(M, C)
    tm = _row_tile(M)
    s, sq = pl.pallas_call(
        _bn_stats_kernel,
        out_shape=(jax.ShapeDtypeStruct((1, C), jnp.float32),
                   jax.ShapeDtypeStruct((1, C), jnp.float32)),
        grid=(M // tm,),
        in_specs=[pl.BlockSpec((tm, C), lambda i: (i, 0))],
        out_specs=(pl.BlockSpec((1, C), lambda i: (0, 0)),
                   pl.BlockSpec((1, C), lambda i: (0, 0))),
        compiler_params=pltpu.CompilerParams(
            dimension_semantics=("arbitrary",)),
    )(x2)
    mean = s / M
    var = jnp.maximum(sq / M - mean * mean, 0.0)      # biased batch variance
    scale = gamma.reshape(1, C) * jax.lax.rsqrt(var + 1e-5)
    shift = beta.reshape(1, C) - mean * scale
    out = pl.pallas_call(
        _bn_apply_relu_kernel,
        out_shape=jax.ShapeDtypeStruct((M, C), out_dtype),
        grid=(M // tm,),
        in_specs=[pl.BlockSpec((tm, C), lambda i: (i, 0)),
                  pl.BlockSpec((1, C), lambda i: (0, 0)),
                  pl.BlockSpec((1, C), lambda i: (0, 0))],
        out_specs=pl.BlockSpec((tm, C), lambda i: (i, 0)),
        compiler_params=pltpu.CompilerParams(
            dimension_semantics=("parallel",)),
    )(x2, scale, shift)
    return out.reshape(N, H, W, C)


def _rgb_tanh_kernel(h_ref, w_ref, o_ref):
    z = jnp.dot(h_ref[...], w_ref[...], preferred_element_type=jnp.float32)
    o_ref[...] = jnp.tanh(z)


def rgb_tanh(x_nhwc, w_rgb):
    """Fused toRGB (1x1 conv, no bias) + tanh, tiled over rows."""
    N, H, W, C = x_nhwc.shape
    M = N * H * W
    tm = _row_tile(M)
    out = pl.pallas_call(
        _rgb_tanh_kernel,
        out_shape=jax.ShapeDtypeStruct((M, nc), jnp.float32),
        grid=(M // tm,),
        in_specs=[pl.BlockSpec((tm, C), lambda i: (i, 0)),
                  pl.BlockSpec((C, nc), lambda i: (0, 0))],
        out_specs=pl.BlockSpec((tm, nc), lambda i: (i, 0)),
        compiler_params=pltpu.CompilerParams(
            dimension_semantics=("parallel",)),
    )(x_nhwc.reshape(M, C), w_rgb)
    return out.reshape(N, H, W, nc)


def _rgb_blend_tanh_kernel(a_ref, zin_ref, h_ref, wlo_ref, whi_ref, o_ref):
    a = a_ref[0, 0]
    y = jnp.dot(zin_ref[...], wlo_ref[...], preferred_element_type=jnp.float32)
    z = jnp.dot(h_ref[...], whi_ref[...], preferred_element_type=jnp.float32)
    o_ref[...] = jnp.tanh((1.0 - a) * y + a * z)


def rgb_blend_tanh(zin_nhwc, h_nhwc, w_lo, w_hi, alpha):
    """Fused fade-in tail: tanh((1-a)*toRGB_lo(zin) + a*toRGB_hi(h)).

    Uses toRGB(upsample(x)) == upsample(toRGB(x)) (a 1x1 conv commutes with
    nearest-neighbor upsampling), so the low-res RGB branch never materializes
    a lane-sparse (M, 3) intermediate in HBM.  alpha lives in SMEM, so the
    compiled kernel is alpha-independent (no recompile per fade-in step).
    """
    N, H, W, C_lo = zin_nhwc.shape
    C_hi = h_nhwc.shape[-1]
    M = N * H * W
    tm = _row_tile(M)
    a = jnp.full((1, 1), alpha, jnp.float32)
    out = pl.pallas_call(
        _rgb_blend_tanh_kernel,
        out_shape=jax.ShapeDtypeStruct((M, nc), jnp.float32),
        grid=(M // tm,),
        in_specs=[pl.BlockSpec(memory_space=pltpu.MemorySpace.SMEM),
                  pl.BlockSpec((tm, C_lo), lambda i: (i, 0)),
                  pl.BlockSpec((tm, C_hi), lambda i: (i, 0)),
                  pl.BlockSpec((C_lo, nc), lambda i: (0, 0)),
                  pl.BlockSpec((C_hi, nc), lambda i: (0, 0))],
        out_specs=pl.BlockSpec((tm, nc), lambda i: (i, 0)),
        compiler_params=pltpu.CompilerParams(
            dimension_semantics=("parallel",)),
    )(a, zin_nhwc.reshape(M, C_lo), h_nhwc.reshape(M, C_hi), w_lo, w_hi)
    return out.reshape(N, H, W, nc)


# ---------------------------------------------------------------------------
# Glue (upsample / parameter bookkeeping / forward)
# ---------------------------------------------------------------------------

def upsample2x(x_nhwc):
    # nn.Upsample(scale_factor=2), default mode='nearest'.
    # TODO(synk): fold the nearest-neighbor duplication into the downstream
    # conv's read pattern instead of materializing the 4x activation in HBM.
    return jnp.repeat(jnp.repeat(x_nhwc, 2, axis=1), 2, axis=2)


def run_gblock_first(p, noise_bf16):
    # GBlock(res=2): ConvT(nz,C,4,1,0) -> BN -> ReLU -> ConvT(C,C,3,1,1) -> BN -> ReLU
    B = noise_bf16.shape[0]
    C = p["w1"].shape[-1]
    h = dense(noise_bf16, p["w0"])               # (B, 16*C); columns in (h,w,c) order
    h = h.reshape(B, 4, 4, C)                    # direct NHWC (no transpose)
    h = batchnorm_relu(h, p["g0"], p["b0"])      # -> bf16
    h = conv3x3_t(h, p["w1"])                    # -> f32
    h = batchnorm_relu(h, p["g1"], p["b1"])      # -> bf16
    return h


def run_gblock(p, x_nhwc):
    # GBlock(res>2): ConvT(Cin,C,3,1,1) -> BN -> ReLU -> ConvT(C,C,3,1,1) -> BN -> ReLU
    h = conv3x3_t(x_nhwc, p["w0"])
    h = batchnorm_relu(h, p["g0"], p["b0"])
    h = conv3x3_t(h, p["w1"])
    h = batchnorm_relu(h, p["g1"], p["b1"])
    return h


def init_params(key, max_res):
    def nrm(k, shape, scale, dtype=jnp.float32):
        return (scale * jax.random.normal(k, shape, dtype=jnp.float32)).astype(dtype)

    params = {"block": {}, "rgb": {}}
    for r in range(2, max_res + 1):
        ks = jax.random.split(jax.random.fold_in(key, r), 7)
        c_out = nf(r - 1)
        if r == 2:
            # ConvTranspose2d(nz, c_out, 4, 1, 0) as a dense (nz -> 4*4*c_out) map,
            # columns ordered (h, w, c) so the output reshapes directly to NHWC.
            w0 = nrm(ks[0], (nz, 16 * c_out), 0.05, jnp.bfloat16)
        else:
            c_in = nf(r - 2)
            w0 = nrm(ks[0], (3, 3, c_in, c_out), 0.05, jnp.bfloat16)
        w1 = nrm(ks[1], (3, 3, c_out, c_out), 0.05, jnp.bfloat16)
        params["block"][r] = dict(
            w0=w0, w1=w1,
            g0=1.0 + nrm(ks[2], (c_out,), 0.1), b0=nrm(ks[3], (c_out,), 0.1),
            g1=1.0 + nrm(ks[4], (c_out,), 0.1), b1=nrm(ks[5], (c_out,), 0.1),
        )
        params["rgb"][r] = nrm(ks[6], (c_out, nc), 0.05, jnp.bfloat16)  # 1x1 conv
    return params


def generator_forward(params, noise, res, alpha):
    """Mirrors Generator.forward(noise, res, alpha). Returns NCHW float32."""
    noise = noise.reshape(-1, nz).astype(jnp.bfloat16)

    x = None
    for i in range(2, res):
        if i == 2:
            x = run_gblock_first(params["block"][2], noise)
        else:
            x = upsample2x(x)
            x = run_gblock(params["block"][i], x)

    if res == 2:
        x = run_gblock_first(params["block"][2], noise)
        out = rgb_tanh(x, params["rgb"][2])
    else:
        zin = upsample2x(x)                      # shared by both fade-in branches
        h = run_gblock(params["block"][res], zin)
        if alpha == 1:
            out = rgb_tanh(h, params["rgb"][res])
        else:
            out = rgb_blend_tanh(zin, h, params["rgb"][res - 1],
                                 params["rgb"][res], alpha)

    return out.transpose(0, 3, 1, 2)             # NHWC -> NCHW (PyTorch convention)


if __name__ == "__main__":
    key = jax.random.PRNGKey(0)
    B = 2
    res = 3          # output resolution 8x8
    alpha = 0.5      # exercise the fused fade-in blend path

    params = init_params(key, max_res=res)
    noise = jax.random.normal(jax.random.fold_in(key, 12345), (B, nz),
                              dtype=jnp.float32)

    out = generator_forward(params, noise, res, alpha)
    out = jax.block_until_ready(out)

    side = 4 * 2 ** (res - 2)
    assert out.shape == (B, nc, side, side), out.shape
    assert out.dtype == jnp.float32
    assert bool(jnp.all(jnp.isfinite(out)))
    print("KERNEL_OK")
</pallas_src>

<mosaic_0001>
module attributes {stable_mosaic.version = 11 : i64} {
  func.func @_dense_kernel(%arg0: i32, %arg1: memref<2x100xbf16, #tpu.memory_space<vmem>>, %arg2: memref<100x512xbf16, #tpu.memory_space<vmem>>, %arg3: memref<2x512xf32, #tpu.memory_space<vmem>>) attributes {dimension_semantics = [#tpu.dimension_semantics<parallel>], iteration_bounds = array<i64: 16>, scalar_prefetch = 0 : i64, scratch_operands = 0 : i64, tpu.core_type = #tpu.core_type<tc>, window_params = [{pipeline_mode = #tpu.pipeline_mode<synchronous>, transform_indices = @transform_0, window_bounds = array<i64: 2, 100>}, {transform_indices = @transform_1, window_bounds = array<i64: 100, 512>}, {transform_indices = @transform_2, window_bounds = array<i64: 2, 512>}]} {
    %c0 = arith.constant 0 : index
    %c0_0 = arith.constant 0 : index
    %0 = vector.load %arg1[%c0, %c0_0] : memref<2x100xbf16, #tpu.memory_space<vmem>>, vector<2x100xbf16>
    %c0_1 = arith.constant 0 : index
    %c0_2 = arith.constant 0 : index
    %1 = vector.load %arg2[%c0_1, %c0_2] : memref<100x512xbf16, #tpu.memory_space<vmem>>, vector<100x512xbf16>
    %cst = arith.constant dense<0.000000e+00> : vector<2x512xf32>
    %2 = tpu.matmul %0, %1, %cst {dimension_numbers = #tpu.dot_dimension_numbers<[1], [0], [0], [1], [0, 0, 1, 1], [], []>} : vector<2x100xbf16>, vector<100x512xbf16>, vector<2x512xf32> -> vector<2x512xf32>
    %c0_3 = arith.constant 0 : index
    %c0_4 = arith.constant 0 : index
    %3 = vector.load %arg3[%c0_3, %c0_4] : memref<2x512xf32, #tpu.memory_space<vmem>>, vector<2x512xf32>
    tpu.vector_store %arg3[%c0_3, %c0_4], %2 {strides = array<i32>} : memref<2x512xf32, #tpu.memory_space<vmem>>, vector<2x512xf32>,
    return
  }
  func.func @transform_0(%arg0: i32) -> (i32, i32) {
    %c0_i32 = arith.constant 0 : i32
    %c0_i32_0 = arith.constant 0 : i32
    %c0_i32_1 = arith.constant 0 : i32
    return %c0_i32, %c0_i32_0 : i32, i32
  }
  func.func @transform_1(%arg0: i32) -> (i32, i32) {
    %c0_i32 = arith.constant 0 : i32
    %c0_i32_0 = arith.constant 0 : i32
    return %c0_i32, %arg0 : i32, i32
  }
  func.func @transform_2(%arg0: i32) -> (i32, i32) {
    %c0_i32 = arith.constant 0 : i32
    %c0_i32_0 = arith.constant 0 : i32
    return %c0_i32, %arg0 : i32, i32
  }
}

</mosaic_0001>

<bundles_post_ra>
// kernel: tpu_custom_call.1
= control target key start
LH: loop header
LB: loop body
LE: loop exit
PB: predicated region body
PF: predicated region fallthrough
CT: control target
= control target key end

     0   :  { %7 = vsyncpa [#allocation3], 0  ;;  %s1082_s0 = inlined_call_operand.hbm [shape: bf16[2,100], index: 0, kind: input, shape index: {}]   ;;  %s1083_s1 = inlined_call_operand.hbm [shape: bf16[100,8192], index: 1, kind: input, shape index: {}]   ;;  %s1084_s2 = inlined_call_operand.hbm [shape: f32[2,8192], index: 2, kind: output, shape index: {}]  }
   0x1   :  { %8 = vsyncpa [#allocation6], 0 }
   0x2   :  { %10 = vsyncpa [#allocation6 + $0x1], 0 }
   0x3   :  { %11 = vsyncpa [#allocation4], 0 }
   0x4   :  { %13 = vsyncpa [#allocation4 + $0x1], 0  ;;  %s859_s9 = smov 0   ;;  %s861_s10 = smov 0  }
   0x5   :  { %s863_s11 = smov 0   ;;  %s865_s12 = smov 0  }
   0x6 LB: > { %s880_s13 = sadd.s32 4294967295, %s834_s12   ;;  %s554_s14 = sadd.s32 4294967294, %s834_s12   ;;  %s834_s12 = sphi %s865_s12, %s1107_s12   ;;  %s830_s11 = sphi %s863_s11, %s1106_s11   ;;  %s826_s10 = sphi %s861_s10, %s1105_s10   ;;  %s822_s9 = sphi %s859_s9, %s1104_s9  }
   0x7   : > { %s884_s15 = sadd.s32 1, %s834_s12   ;;  %s47_s16 = sadd.s32 1, %s830_s11 }
   0x8   : > { %s44_s17 = ssub.s32 %s834_s12, %s884_s15  ;;  %p54_p0 = scmp.ne.s32.totalorder %s830_s11, %s826_s10 }
   0x9   : > { %p45_p1 = scmp.eq.s32.totalorder %s44_s17, 0  ;;  %p55_p2 = scmp.eq.s32.totalorder %s834_s12, 0 }
   0xa   : > { %p60_p3 = scmp.ne.s32.totalorder %s826_s10, %s822_s9  ;;  %p1085_p4 = scmp.eq.s32.totalorder %s880_s13, 0 }
   0xb   : > { %s896_s18 = scalar_select %p45_p1, %s830_s11, %s47_s16  }
   0xc   : > { %p898_p5 = por %p55_p2, %p54_p0  ;;  %p904_p6 = por %p1085_p4, %p60_p3 }
   0xd   : > { %p84_p7 = scmp.eq.s32.totalorder %s880_s13, 15  ;;  %p90_p8 = scmp.eq.s32.totalorder %s554_s14, 15 }
   0xe   : > { %s1091_s20 = scalar_select %p904_p6, 1, 0 }
   0xf   : > { %p555_p9 = scmp.ge.s32.totalorder %s834_s12, 1  ;;  %p97_p10 = scmp.lt.s32.totalorder %s834_s12, 17 }
  0x10   : > { %p911_p11 = por %p84_p7, %p54_p0  ;;  %p915_p12 = por %p90_p8, %p60_p3 }
  0x11   : > { %p919_p13 = pnand %p555_p9, %p97_p10  ;;  %s836_s24 = smov [#allocation2]  }
  0x12   : > { %s1092_s21 = scalar_select %p911_p11, 1, 0 }
  0x13   : > { %s1093_s22 = scalar_select %p915_p12, 1, 0 }
  0x14   : > { %s1094_s23 = scalar_select %p919_p13, 1, 0 }
  0x15   : > { %p612_p1 = pneg %p919_p13  ;;  %s110_s25 = sshll.u32 %s836_s24, 4  ;;  %s111_s25 = int_to_ptr.vmem [resolvable:$true] %s110_s25 }
  0x16   : > { %p625_p2 = scmp.lt.s32.totalorder %s834_s12, 16  ;;  %s121_s27 = sand.u32 1, %s830_s11  }
  0x17   : > { %p928_p0 = pnand %p612_p1, %p1085_p4  ;;  %s602_s29 = smul.u32 208, %s121_s27 }
  0x18   : > { %p935_p3 = pnand %p625_p2, %p898_p5  ;;  %s706_s4 = scalar_lea.hbm %s1082_s0, 16 }
  0x19   : > { %p707_p7 = scmp.ne.s32.totalorder %s1082_s0, %s706_s4  ;;  %p708_p8 = pneg %p928_p0 }
  0x1a   : > { %s1096_s28 = scalar_select %p935_p3, 1, 0 }
  0x1b   : > { %p709_p9 = pnand %p708_p8, %p707_p7  ;;  %p713_p5 = scmp.lt.u32.totalorder %s706_s4, %s1082_s0 }
  0x1d   : > { %p710_p10 = pneg %p709_p9 }
  0x1f   : > { %p715_p1 = pnand %p713_p5, %p710_p10 }
  0x21   : > { %718 = shalt.err (!%p715_p1)
}
  0x22   : > { %s719_s14 = scalar_lea.vmem %s111_s25, 16  ;;  %s726_s16 = scalar_lea.vmem %s111_s25, 32 }
  0x23   : > { %p720_p2 = scmp.ne.s32.totalorder %s111_s25, %s719_s14  ;;  %p727_p11 = scmp.lt.s32.totalorder %s111_s25, %s111_s25 }
  0x24   : > { %p728_p6 = scmp.lt.s32.totalorder %s726_s16, %s719_s14 }
  0x25   : > { %p722_p4 = pnand %p720_p2, %p708_p8 }
  0x26   : > { %p729_p13 = por %p728_p6, %p727_p11 }
  0x27   : > { %p723_p12 = pneg %p722_p4 }
  0x29   : > { %p730_p3 = pnand %p729_p13, %p723_p12 }
  0x2b   : > { %733 = shalt.err (!%p730_p3)
}
  0x2c   : > { %615 = dma.hbm_to_vmem [thread:$0]  (!%p928_p0), %s1082_s0, 16, %s111_s25, [#allocation3]  }
  0x2d   : > { %s600_s24 = sshll.u32 %s834_s12, 8  ;;  %s125_s30 = scalar_lea.vmem [#allocation5], %s602_s29 }
  0x2e   : > { %s132_s3 = sshll.u32 %s125_s30, 4  ;;  %s959_s6 = scalar_lea.hbm %s1083_s1, %s600_s24  ;;  %s961_s3 = int_to_ptr.vmem [resolvable:$true] %s132_s3 }
  0x2f   : > { %s963_s26 = scalar_lea.sflag [#allocation6], %s121_s27  ;;  %s734_s7 = scalar_lea.hbm %s959_s6, 3328 }
  0x30   : > { %p735_p4 = scmp.ne.s32.totalorder %s959_s6, %s734_s7  ;;  %p1097_p6 = scmp.ne.s32.totalorder %s1096_s28, 0 }
  0x31   : > { %s739_s8 = scalar_lea.hbm %s1083_s1, 53248  ;;  %p740_p0 = scmp.lt.u32.totalorder %s959_s6, %s1083_s1 }
  0x32   : > { %p736_p11 = pneg %p1097_p6  ;;  %p741_p3 = scmp.lt.u32.totalorder %s739_s8, %s734_s7 }
  0x33   : > { %p743_p8 = scmp.lt.u32.totalorder %s734_s7, %s959_s6 }
  0x34   : > { %p737_p12 = pnand %p736_p11, %p735_p4  ;;  %p742_p7 = por %p741_p3, %p740_p0 }
  0x36   : > { %p738_p13 = pneg %p737_p12  ;;  %p744_p9 = por %p743_p8, %p742_p7 }
  0x38   : > { %p745_p10 = pnand %p744_p9, %p738_p13 }
  0x3a   : > { %748 = shalt.err (!%p745_p10)
}
  0x3b   : > { %s749_s27 = scalar_lea.vmem %s961_s3, 3328  ;;  %s837_s17 = smov [#allocation5]  }
  0x3c   : > { %p750_p5 = scmp.ne.s32.totalorder %s961_s3, %s749_s27  ;;  %s754_s19 = sshll.u32 %s837_s17, 4  ;;  %s755_s19 = int_to_ptr.vmem [resolvable:$false] %s754_s19 }
  0x3d   : > { %s756_s24 = scalar_lea.vmem %s755_s19, 6656  ;;  %p757_p4 = scmp.lt.s32.totalorder %s961_s3, %s755_s19 }
  0x3e   : > { %p752_p1 = pnand %p750_p5, %p736_p11  ;;  %p758_p12 = scmp.lt.s32.totalorder %s756_s24, %s749_s27 }
  0x40   : > { %p753_p2 = pneg %p752_p1  ;;  %p759_p0 = por %p758_p12, %p757_p4 }
  0x42   : > { %p760_p3 = pnand %p759_p0, %p753_p2 }
  0x44   : > { %763 = shalt.err (!%p760_p3)
}
  0x45   : > { %s838_s30 = smov 4096   ;;  %s839_s4 = smov 256  }
  0x46   : > { %s840_s5 = smov 16   ;;  %p1098_p11 = scmp.ne.s32.totalorder %s1094_s23, 0 }
  0x47   : > { %619 = dma.hbm_to_vmem [thread:$0]  (!%p1097_p6), %s959_s6, 3328, %s961_s3, %s963_s26, %s838_s30, %s839_s4, %s840_s5  }
  0x48   : > { %144 = sbr.rel (%p1098_p11) target bundleno = 348 (0x15c), region = 28  ;;  %p1099_p13 = scmp.eq.s32.totalorder (!%p1098_p11), %s880_s13, 0 }
  0x4f   : > { %809 = dma.done.wait (%p1099_p13), [#allocation3], 16   ;;  %p1100_p7 = pmov %p1099_p13 }
  0x50   : > { %s998_s7 = sand.u32 1, %s826_s10   ;;  %p1101_p6 = scmp.ne.s32.totalorder %s1091_s20, 0 }
  0x51   : > { %811 = vsyncadd (%p1100_p7), [#allocation3], 4294967280  ;;  %s603_s25 = smul.u32 208, %s998_s7  ;;  %s151_s29 = scalar_lea.sflag [#allocation6], %s998_s7 }
  0x53   : > { %s1002_s8 = scalar_lea.vmem [#allocation5], %s603_s25 }
  0x54   : > { %813 = dma.done.wait (%p1101_p6), %s151_s29, 3328  }
  0x55   : > { %815 = vsyncadd (%p1101_p6), %s151_s29, 4294963968  ;;  %v841_v0 = vmov 0   ;;  %v666_v1 = vld [vmem:[%s1002_s8 + $0x4] ss:$16 sps:$4 sm:$0xff]   ;;  %v668_v2 = vld [vmem:[%s1002_s8 + $0xc] ss:$16 sps:$4 sm:$0xff]   ;;  %v443_v36 = vlaneseq }
  0x56   : > { %384 = vmatprep.mubr.bf16.mxu0 %v841_v0  ;;  %425 = vmatprep.mubr.bf16.mxu1 %v841_v0  ;;  %v670_v3 = vld [vmem:[%s1002_s8] ss:$16 sps:$4 sm:$0xff]   ;;  %v671_v4 = vld [vmem:[%s1002_s8 + $0x8] ss:$16 sps:$4 sm:$0xff]   ;;  %v672_v5 = vld [vmem:[%s1002_s8 + $0x24] ss:$16 sps:$4 sm:$0xff]  }
  0x57   : > { %352 = vmatprep.subr.bf16.mxu0 %v666_v1  ;;  %393 = vmatprep.subr.bf16.mxu1 %v668_v2  ;;  %v674_v6 = vld [vmem:[%s1002_s8 + $0x2c] ss:$16 sps:$4 sm:$0xff]   ;;  %v676_v7 = vld [vmem:[%s1002_s8 + $0x20] ss:$16 sps:$4 sm:$0xff]   ;;  %v677_v8 = vld [vmem:[%s1002_s8 + $0x28] ss:$16 sps:$4 sm:$0xff]  }
  0x58   : > { %353 = vmatpush1.bf16.msra.mxu0 %v670_v3  ;;  %394 = vmatpush1.bf16.msra.mxu1 %v671_v4  ;;  %v678_v9 = vld [vmem:[%s1002_s8 + $0x44] ss:$16 sps:$4 sm:$0xff]   ;;  %v680_v10 = vld [vmem:[%s1002_s8 + $0x4c] ss:$16 sps:$4 sm:$0xff]   ;;  %v682_v11 = vld [vmem:[%s1002_s8 + $0x40] ss:$16 sps:$4 sm:$0xff]  }
  0x59   : > { %354 = vmatprep.subr.bf16.mxu0 %v672_v5  ;;  %395 = vmatprep.subr.bf16.mxu1 %v674_v6  ;;  %v683_v12 = vld [vmem:[%s1002_s8 + $0x48] ss:$16 sps:$4 sm:$0xff]   ;;  %v684_v13 = vld [vmem:[%s1002_s8 + $0x64] ss:$16 sps:$4 sm:$0xff]   ;;  %v686_v14 = vld [vmem:[%s1002_s8 + $0x6c] ss:$16 sps:$4 sm:$0xff]  }
  0x5a   : > { %v688_v15 = vld [vmem:[%s1002_s8 + $0x60] ss:$16 sps:$4 sm:$0xff]   ;;  %v689_v16 = vld [vmem:[%s1002_s8 + $0x68] ss:$16 sps:$4 sm:$0xff]   ;;  %v690_v17 = vld [vmem:[%s1002_s8 + $0x84] ss:$16 sps:$4 sm:$0xff]  }
  0x5b   : > { %v692_v18 = vld [vmem:[%s1002_s8 + $0x8c] ss:$16 sps:$4 sm:$0xff]   ;;  %v694_v19 = vld [vmem:[%s1002_s8 + $0x80] ss:$16 sps:$4 sm:$0xff]   ;;  %v695_v20 = vld [vmem:[%s1002_s8 + $0x88] ss:$16 sps:$4 sm:$0xff]  }
  0x5c   : > { %355 = vmatpush1.bf16.msra.mxu0 %v676_v7  ;;  %396 = vmatpush1.bf16.msra.mxu1 %v677_v8  ;;  %v696_v21 = vld [vmem:[%s1002_s8 + $0xa4] ss:$16 sps:$4 sm:$0xff]   ;;  %v698_v22 = vld [vmem:[%s1002_s8 + $0xac] ss:$16 sps:$4 sm:$0xff]   ;;  %v700_v25 = vld [vmem:[%s1002_s8 + $0xa0] ss:$16 sps:$4 sm:$0xff]  }
  0x5d   : > { %356 = vmatprep.subr.bf16.mxu0 %v678_v9  ;;  %397 = vmatprep.subr.bf16.mxu1 %v680_v10  ;;  %v203_v23 = vld [vmem:[%s1002_s8 + $0xc0] sm:$0x33]  ;;  %v204_v24 = vld [vmem:[%s1002_s8 + $0xc8] sm:$0x33]  ;;  %vm339_vm0 = vcmask 1041408   ;;  %vm335_vm1 = vcmask 818176  }
  0x5e   : > { %v701_v26 = vld [vmem:[%s1002_s8 + $0xa8] ss:$16 sps:$4 sm:$0xff]   ;;  %v588_v27 = vcombine.high %v203_v23, %v203_v23  ;;  %v590_v28 = vcombine.high %v204_v24, %v204_v24  ;;  %v587_v29 = vcombine.low %v203_v23, %v203_v23  ;;  %v589_v30 = vcombine.low %v204_v24, %v204_v24  ;;  %v178_v33 = vld [vmem:[#allocation2] sm:$0x1]  ;;  %s562_s20 = sshll.u32 %s998_s7, 3  ;;  %s601_s23 = sshll.u32 %s880_s13, 7 }
  0x5f   : > { %v842_v34 = vmov 1983009808   ;;  %v444_v38 = vshrl.u32 %v443_v36, 7  ;;  %s174_s28 = scalar_lea.vmem [#allocation7], %s562_s20  ;;  %s1039_s14 = scalar_lea.hbm %s1084_s2, %s601_s23 }
  0x60   : > { %357 = vmatpush1.bf16.msra.mxu0 %v682_v11  ;;  %398 = vmatpush1.bf16.msra.mxu1 %v683_v12  ;;  %v341_v31 = vsel %vm339_vm0, %v587_v29, 0  ;;  %v347_v32 = vsel %vm339_vm0, %v589_v30, 0  ;;  %v441_v35 = vunpack.c.l.s4 %v842_v34  ;;  %s472_s3 = sshll.u32 %s174_s28, 4  ;;  %s458_s16 = scalar_lea.sflag [#allocation4], %s998_s7  ;;  %s1041_s3 = int_to_ptr.vmem [resolvable:$true] %s472_s3 }
  0x61   : > { %358 = vmatprep.subr.bf16.mxu0 %v684_v13  ;;  %399 = vmatprep.subr.bf16.mxu1 %v686_v14  ;;  %s764_s27 = scalar_lea.vmem %s1041_s3, 128  ;;  %p1102_p9 = scmp.ne.s32.totalorder %s1092_s21, 0 }
  0x62   : > { %v442_v37 = vunpack.c.0.s8 %v441_v35  ;;  %p765_p8 = scmp.ne.s32.totalorder %s1041_s3, %s764_s27  ;;  %s843_s13 = smov [#allocation7]  }
  0x63   : > { %s768_s17 = sshll.u32 %s843_s13, 4  ;;  %s769_s17 = int_to_ptr.vmem [resolvable:$false] %s768_s17 }
  0x64   : > { %359 = vmatpush1.bf16.msra.mxu0 %v688_v15  ;;  %400 = vmatpush1.bf16.msra.mxu1 %v689_v16  ;;  %v445_v41 = vsub.s32 %v442_v37, %v444_v38  ;;  %p766_p10 = pnand %p765_p8, %p1102_p9  ;;  %s770_s19 = scalar_lea.vmem %s769_s17, 256 }
  0x65   : > { %360 = vmatprep.subr.bf16.mxu0 %v690_v17  ;;  %401 = vmatprep.subr.bf16.mxu1 %v692_v18  ;;  %p771_p1 = scmp.lt.s32.totalorder %s1041_s3, %s769_s17  ;;  %p772_p2 = scmp.lt.s32.totalorder %s770_s19, %s764_s27 }
  0x66   : > { %p767_p5 = pneg %p766_p10 }
  0x67   : > { %p773_p4 = por %p772_p2, %p771_p1 }
  0x68   : > { %361 = vmatpush1.bf16.msra.mxu0 %v694_v19  ;;  %402 = vmatpush1.bf16.msra.mxu1 %v695_v20 }
  0x69   : > { %362 = vmatprep.subr.bf16.mxu0 %v696_v21  ;;  %403 = vmatprep.subr.bf16.mxu1 %v698_v22  ;;  %p774_p12 = pnand %p773_p4, %p767_p5 }
  0x6c   : > { %363 = vmatpush1.bf16.msra.mxu0 %v700_v25  ;;  %404 = vmatpush1.bf16.msra.mxu1 %v701_v26 }
  0x6d   : > { %591 = vmatprep.subr.msk.bf16.mxu0 %vm339_vm0, %v588_v27  ;;  %593 = vmatprep.subr.msk.bf16.mxu1 %vm339_vm0, %v590_v28 }
  0x70   : > { %365 = vmatpush1.bf16.msra.mxu0 %v341_v31  ;;  %406 = vmatpush1.bf16.msra.mxu1 %v347_v32 }
  0x73   : > { %592 = vmatmul.mubr.msk.bf16.vlgmr.msra.gmra.mrb[0].mxu0 %vm335_vm1, %v178_v33  ;;  %594 = vmatmul.mubr.msk.bf16.vlgmr.msra.gmra.mrb[0].mxu1 %vm335_vm1, %v178_v33 }
 0x146   : > { %v386_v39 = vpop.f32.mrb[0].mxu0  ;;  %v427_v40 = vpop.f32.mrb[0].mxu1 }
 0x147   : > { %v388_v42 = vpop.f32.mrb[1].mxu0  ;;  %v429_v43 = vpop.f32.mrb[1].mxu1 }
 0x148   : > { %v438_v44 = vcombine.low %v386_v39, %v388_v42  ;;  %v439_v45 = vcombine.low %v427_v40, %v429_v43  ;;  %v390_v46 = vpop.f32.mrb[2].mxu0  ;;  %v431_v47 = vpop.f32.mrb[2].mxu1 }
 0x149   : > { %v391_v48 = vpop.f32.mrb[3].mxu0  ;;  %v432_v49 = vpop.f32.mrb[3].mxu1 }
 0x14a   : > { %v446_v50 = vrot.slane %v438_v44, %v445_v41  ;;  %v453_v51 = vrot.slane %v439_v45, %v445_v41 }
 0x14c   : > { %v454_v52 = vcombine.low %v446_v50, %v453_v51 }
 0x14e   : > { %456 = vst [vmem:[%s174_s28] sm:$0xff] %v454_v52 }
 0x14f   : > { %777 = shalt.err (!%p774_p12)
}
 0x150   : > { %s778_s24 = scalar_lea.hbm %s1039_s14, 128  ;;  %s782_s5 = scalar_lea.hbm %s1084_s2, 2048 }
 0x151   : > { %p779_p0 = scmp.ne.s32.totalorder %s1039_s14, %s778_s24  ;;  %p783_p13 = scmp.lt.u32.totalorder %s1039_s14, %s1084_s2 }
 0x152   : > { %p784_p7 = scmp.lt.u32.totalorder %s782_s5, %s778_s24  ;;  %p786_p8 = scmp.lt.u32.totalorder %s778_s24, %s1039_s14 }
 0x153   : > { %p780_p3 = pnand %p779_p0, %p1102_p9 }
 0x154   : > { %p785_p6 = por %p784_p7, %p783_p13 }
 0x155   : > { %p781_p11 = pneg %p780_p3 }
 0x156   : > { %p787_p10 = por %p786_p8, %p785_p6 }
 0x158   : > { %p788_p5 = pnand %p787_p10, %p781_p11 }
 0x15a   : > { %791 = shalt.err (!%p788_p5)
}
 0x15b   : > { %610 = dma.vmem_to_hbm [thread:$0]  (%p1102_p9), %s1041_s3, 128, %s1039_s14, %s458_s16  }
 0x15c PF: > { %p627_p1 = scmp.ge.s32.totalorder %s834_s12, 2  ;;  %s484_s29 = sand.u32 1, %s822_s9  }
 0x15d   : > { %p1103_p2 = scmp.ne.s32.totalorder %s1093_s22, 0  ;;  %s485_s8 = scalar_lea.sflag [#allocation4], %s484_s29 }
 0x15f   : > { %p621_p4 = pnand %p627_p1, %p1103_p2 }
 0x161   : > { %817 = dma.done.wait (!%p621_p4), %s485_s8, 128  }
 0x162   : > { %819 = vsyncadd (!%p621_p4), %s485_s8, 4294967168  ;;  %p16_p12 = scmp.ge.s32.totalorder %s884_s15, 18   ;;  %s1104_s9 = smov %s826_s10 }
 0x163   : > { %s1105_s10 = smov %s830_s11  ;;  %s1106_s11 = smov %s896_s18 }
 0x164   : > { %s1107_s12 = smov %s884_s15  ;;  %18 = sbr.rel (!%p16_p12) target bundleno = 6 (0x6), region = 78 }
 0x16b   :  { %490 = vsyncpa [#allocation3], 1 }
 0x16c   :  { %492 = vsyncpa [#allocation3 + $0x1], 1 }
 0x16d   :  { %493 = vsyncpa [#allocation6], 1 }
 0x16e   :  { %495 = vsyncpa [#allocation6 + $0x1], 1 }
 0x16f   :  { %496 = vsyncpa [#allocation4], 1 }
 0x170   :  { %498 = vsyncpa [#allocation4 + $0x1], 1 }

</bundles_post_ra>
